<compile_context>
chip_gen: v5e
topology: v5e:2x2
jax: 0.10.0
libtpu: 0.0.40
codegen_flags: <defaults>
</compile_context>

<pallas_src>
import functools

import jax
import jax.numpy as jnp
from jax import lax
from jax.experimental import pallas as pl
from jax.experimental.pallas import tpu as pltpu

EPS = 1e-12  # matches torch.nn.functional.normalize default eps


def _model_with_normalize_kernel(x_ref, w_ref, b_ref, o_ref):
    # Backbone: linear layer (MXU matmul + bias broadcast), f32 accumulation.
    y = jnp.dot(x_ref[...], w_ref[...], preferred_element_type=jnp.float32)
    y = y + b_ref[...]  # b_ref is (1, D_out), broadcasts over rows

    # L2 normalize along the feature axis (PyTorch dim=1):
    #   out = y / max(||y||_2, eps)  ==  y * rsqrt(max(sum(y^2), eps^2))
    # (rsqrt goes to the otherwise-idle EUP slot; divide/sqrt would sit on
    #  the VPU path.)
    sq_sum = jnp.sum(y * y, axis=1, keepdims=True)          # (TB, 1)
    inv = lax.rsqrt(jnp.maximum(sq_sum, EPS * EPS))          # 1 / max(||y||, eps)
    o_ref[...] = (y * inv).astype(o_ref.dtype)


def _pick_batch_tile(B: int) -> int:
    """Pick a batch tile: whole batch when small, else a large aligned tile."""
    if B <= 1024:
        return B  # single tile; block == full dim is always legal
    for tb in (1024, 512, 256, 128):
        if B % tb == 0:
            return tb
    # Fall back to a fixed multiple-of-8 tile; rows are independent so the
    # padded partial last block is harmless.
    return 512


@functools.partial(jax.jit, static_argnames=())
def model_with_normalize(x, w, b):
    """x: (B, D_in) f32, w: (D_in, D_out) f32, b: (D_out,) f32 -> (B, D_out) f32."""
    B, D_in = x.shape
    D_out = w.shape[1]
    b2d = b.reshape(1, D_out)

    TB = _pick_batch_tile(B)
    grid = (pl.cdiv(B, TB),)

    # VMEM budget: double-buffered x/out tiles + resident W and bias, with
    # headroom.  Sized conservatively so it stays well under v7x's 64 MiB
    # physical VMEM per TensorCore.
    est_bytes = 4 * (2 * TB * (D_in + D_out) + D_in * D_out + 2 * D_out)
    vmem_limit = int(min(max(4 * est_bytes, 4 << 20), 48 << 20))

    cost = pl.CostEstimate(
        flops=2 * B * D_in * D_out,
        transcendentals=B,  # one rsqrt per row
        bytes_accessed=4 * (B * D_in + D_in * D_out + D_out + B * D_out),
    )

    # TODO(synk): feed bf16 x/w to the MXU on v6e/v7x if bf16-grade precision
    # is acceptable upstream; kept f32 here to preserve 1e-5 accuracy.
    return pl.pallas_call(
        _model_with_normalize_kernel,
        out_shape=jax.ShapeDtypeStruct((B, D_out), jnp.float32),
        grid_spec=pltpu.PrefetchScalarGridSpec(
            num_scalar_prefetch=0,
            grid=grid,
            in_specs=[
                pl.BlockSpec((TB, D_in), lambda i: (i, 0)),     # streamed per tile
                pl.BlockSpec((D_in, D_out), lambda i: (0, 0)),  # resident weight
                pl.BlockSpec((1, D_out), lambda i: (0, 0)),     # resident bias
            ],
            out_specs=pl.BlockSpec((TB, D_out), lambda i: (i, 0)),
        ),
        compiler_params=pltpu.CompilerParams(
            dimension_semantics=("parallel",),  # megacore-shardable batch axis
            vmem_limit_bytes=vmem_limit,
        ),
        cost_estimate=cost,
    )(x, w, b2d)


def _reference(x, w, b):
    y = x @ w + b
    denom = jnp.maximum(jnp.sqrt(jnp.sum(y * y, axis=1, keepdims=True)), EPS)
    return y / denom


if __name__ == "__main__":
    key = jax.random.PRNGKey(0)

    # --- Small shapes consistent with the forward: (B, D_in) -> (B, D_out),
    #     normalized over dim=1 (features). Single-tile path. ---
    B, D_in, D_out = 8, 32, 128
    kx, kw, kb = jax.random.split(key, 3)
    x = jax.random.normal(kx, (B, D_in), dtype=jnp.float32)
    # Deterministic synthetic backbone parameters (not a checkpoint load).
    w = jax.random.normal(kw, (D_in, D_out), dtype=jnp.float32) * 0.05
    b = jax.random.normal(kb, (D_out,), dtype=jnp.float32) * 0.01

    out = jax.block_until_ready(model_with_normalize(x, w, b))
    ref = _reference(x, w, b)
    assert jnp.allclose(out, ref, atol=1e-5, rtol=1e-5), "mismatch vs reference (small)"
    assert jnp.allclose(
        jnp.linalg.norm(out, axis=1), jnp.ones((B,)), atol=1e-5
    ), "rows not unit-norm (small)"

    # --- Exercise the batch-tiled (multi-grid-step) path. ---
    B2 = 2048  # -> TB=1024, grid=(2,)
    kx2 = jax.random.fold_in(kx, 1)
    x2 = jax.random.normal(kx2, (B2, D_in), dtype=jnp.float32)
    out2 = jax.block_until_ready(model_with_normalize(x2, w, b))
    ref2 = _reference(x2, w, b)
    assert jnp.allclose(out2, ref2, atol=1e-5, rtol=1e-5), "mismatch vs reference (tiled)"
    assert jnp.allclose(
        jnp.linalg.norm(out2, axis=1), jnp.ones((B2,)), atol=1e-5
    ), "rows not unit-norm (tiled)"

    print("KERNEL_OK")
</pallas_src>

<mosaic_0001>
module attributes {stable_mosaic.version = 11 : i64} {
  func.func @_model_with_normalize_kernel(%arg0: i32, %arg1: memref<8x32xf32, #tpu.memory_space<vmem>>, %arg2: memref<32x128xf32, #tpu.memory_space<vmem>>, %arg3: memref<1x128xf32, #tpu.memory_space<vmem>>, %arg4: memref<8x128xf32, #tpu.memory_space<vmem>>) attributes {dimension_semantics = [#tpu.dimension_semantics<parallel>], iteration_bounds = array<i64: 1>, scalar_prefetch = 0 : i64, scratch_operands = 0 : i64, tpu.core_type = #tpu.core_type<tc>, window_params = [{transform_indices = @transform_0, window_bounds = array<i64: 8, 32>}, {pipeline_mode = #tpu.pipeline_mode<synchronous>, transform_indices = @transform_1, window_bounds = array<i64: 32, 128>}, {pipeline_mode = #tpu.pipeline_mode<synchronous>, transform_indices = @transform_2, window_bounds = array<i64: 1, 128>}, {transform_indices = @transform_3, window_bounds = array<i64: 8, 128>}]} {
    %c0 = arith.constant 0 : index
    %c0_0 = arith.constant 0 : index
    %0 = vector.load %arg1[%c0, %c0_0] : memref<8x32xf32, #tpu.memory_space<vmem>>, vector<8x32xf32>
    %c0_1 = arith.constant 0 : index
    %c0_2 = arith.constant 0 : index
    %1 = vector.load %arg2[%c0_1, %c0_2] : memref<32x128xf32, #tpu.memory_space<vmem>>, vector<32x128xf32>
    %cst = arith.constant dense<0.000000e+00> : vector<8x128xf32>
    %2 = tpu.matmul %0, %1, %cst {dimension_numbers = #tpu.dot_dimension_numbers<[1], [0], [0], [1], [0, 0, 1, 1], [], []>} : vector<8x32xf32>, vector<32x128xf32>, vector<8x128xf32> -> vector<8x128xf32>
    %c0_3 = arith.constant 0 : index
    %c0_4 = arith.constant 0 : index
    %3 = vector.load %arg3[%c0_3, %c0_4] : memref<1x128xf32, #tpu.memory_space<vmem>>, vector<1x128xf32>
    %4 = vector.broadcast %3 : vector<1x128xf32> to vector<8x128xf32>
    %5 = arith.addf %2, %4 : vector<8x128xf32>
    %6 = arith.mulf %5, %5 : vector<8x128xf32>
    %cst_5 = arith.constant dense<0.000000e+00> : vector<8xf32>
    %7 = vector.multi_reduction <add>, %6, %cst_5 [1] : vector<8x128xf32> to vector<8xf32>
    %8 = vector.shape_cast %7 : vector<8xf32> to vector<8x1xf32>
    %cst_6 = arith.constant 1.000000e-24 : f32
    %9 = vector.broadcast %cst_6 : f32 to vector<8x1xf32>
    %10 = arith.maximumf %8, %9 : vector<8x1xf32>
    %11 = math.rsqrt %10 : vector<8x1xf32>
    %12 = vector.broadcast %11 : vector<8x1xf32> to vector<8x128xf32>
    %13 = arith.mulf %5, %12 : vector<8x128xf32>
    %c0_7 = arith.constant 0 : index
    %c0_8 = arith.constant 0 : index
    %14 = vector.load %arg4[%c0_7, %c0_8] : memref<8x128xf32, #tpu.memory_space<vmem>>, vector<8x128xf32>
    tpu.vector_store %arg4[%c0_7, %c0_8], %13 {strides = array<i32>} : memref<8x128xf32, #tpu.memory_space<vmem>>, vector<8x128xf32>,
    return
  }
  func.func @transform_0(%arg0: i32) -> (i32, i32) {
    %c0_i32 = arith.constant 0 : i32
    %c0_i32_0 = arith.constant 0 : i32
    return %arg0, %c0_i32 : i32, i32
  }
  func.func @transform_1(%arg0: i32) -> (i32, i32) {
    %c0_i32 = arith.constant 0 : i32
    %c0_i32_0 = arith.constant 0 : i32
    %c0_i32_1 = arith.constant 0 : i32
    return %c0_i32, %c0_i32_0 : i32, i32
  }
  func.func @transform_2(%arg0: i32) -> (i32, i32) {
    %c0_i32 = arith.constant 0 : i32
    %c0_i32_0 = arith.constant 0 : i32
    %c0_i32_1 = arith.constant 0 : i32
    return %c0_i32, %c0_i32_0 : i32, i32
  }
  func.func @transform_3(%arg0: i32) -> (i32, i32) {
    %c0_i32 = arith.constant 0 : i32
    %c0_i32_0 = arith.constant 0 : i32
    return %arg0, %c0_i32 : i32, i32
  }
}

</mosaic_0001>

<bundles_post_ra>
// kernel: model_with_normalize.1
= control target key start
LH: loop header
LB: loop body
LE: loop exit
PB: predicated region body
PF: predicated region fallthrough
CT: control target
= control target key end

     0   :  { %8 = vsyncpa [#allocation3], 0  ;;  %s236_s0 = inlined_call_operand.hbm [shape: f32[8,32], index: 0, kind: input, shape index: {}]   ;;  %s237_s1 = inlined_call_operand.hbm [shape: f32[32,128], index: 1, kind: input, shape index: {}]   ;;  %s238_s2 = inlined_call_operand.vmem [shape: f32[1,128], index: 2, kind: input, shape index: {}]   ;;  %s239_s3 = inlined_call_operand.hbm [shape: f32[8,128], index: 3, kind: output, shape index: {}]  }
   0x1   :  { %9 = vsyncpa [#allocation6], 0 }
   0x2   :  { %10 = vsyncpa [#allocation4], 0  ;;  %s16_s14 = sshll.u32 %s236_s0, 4  ;;  %s199_s15 = smov [#allocation2]   ;;  %s17_s14 = int_to_ptr.hbm [resolvable:$true] %s16_s14 }
   0x3   :  { %s18_s16 = sshll.u32 %s199_s15, 4  ;;  %s26_s19 = sshll.u32 %s237_s1, 4  ;;  %s19_s16 = int_to_ptr.vmem [resolvable:$true] %s18_s16  ;;  %s27_s19 = int_to_ptr.hbm [resolvable:$true] %s26_s19 }
   0x4   :  { %21 = dma.hbm_to_vmem [thread:$0]  %s17_s14, 128, %s19_s16, [#allocation3]  }
   0x5   :  { %s200_s20 = smov [#allocation5]   ;;  %s201_s22 = smov 128  }
   0x6   :  { %s28_s21 = sshll.u32 %s200_s20, 4  ;;  %s202_s23 = smov 8   ;;  %s29_s21 = int_to_ptr.vmem [resolvable:$true] %s28_s21 }
   0x7   :  { %34 = dma.hbm_to_vmem [thread:$0]  %s27_s19, 512, %s29_s21, [#allocation6], %s201_s22, %s201_s22, %s202_s23  }
   0x8   :  { %193 = dma.done.wait [#allocation3], 128  }
   0x9   :  { %194 = vsyncadd [#allocation3], 4294967168 }
   0xa   :  { %195 = dma.done.wait [#allocation6], 512  }
   0xb   :  { %196 = vsyncadd [#allocation6], 4294966784  ;;  %v49_v0 = vld [vmem:[#allocation5 + $0x18] sm:$0xff]  ;;  %v48_v1 = vld [vmem:[#allocation5 + $0x10] sm:$0xff]  ;;  %vm54_vm0 = vcmask 261120   ;;  %s203_s24 = smov [#allocation7]  }
   0xc   :  { %70 = vmatpush.msra.mxu0 %v49_v0  ;;  %v47_v2 = vld [vmem:[#allocation5 + $0x8] sm:$0xff]  ;;  %v46_v3 = vld [vmem:[#allocation5] sm:$0xff]  ;;  %v45_v4 = vld [vmem:[#allocation2] sm:$0xff]  ;;  %s99_s25 = sshll.u32 %s203_s24, 4  ;;  %s100_s25 = int_to_ptr.vmem [resolvable:$true] %s99_s25 }
   0xd   :  { %v118_v5 = vld [vmem:[%s238_s2] ss:$0 sm:$0xff]  ;;  %s101_s2 = sshll.u32 %s239_s3, 4  ;;  %s102_s2 = int_to_ptr.hbm [resolvable:$true] %s101_s2 }
   0xe   :  { %71 = vmatpush.msra.mxu0 %v48_v1 }
  0x10   :  { %72 = vmatpush.msra.mxu0 %v47_v2 }
  0x12   :  { %73 = vmatpush.msra.mxu0 %v46_v3 }
  0x13   :  { %112 = vmatmul.msk.f32.vlgmr.msra.gmra.mxu0 %vm54_vm0, %v45_v4 }
  0x90   :  { %v75_v6 = vpop.f32.mrf.mxu0 }
  0x91   :  { %v76_v7 = vadd.f32 %v118_v5, %v75_v6 }
  0x93   :  { %v78_v8 = vmul.f32 %v76_v7, %v76_v7 }
  0x95   :  { %79 = vadd.xlane.f32.xlu0 %v78_v8 }
 0x108   :  { %v80_v9 = vpop.xlane.xlu0 %79 }
 0x109   :  { %v81_v10 = vmax.f32 %v80_v9, 1e-24 }
 0x10b   :  { %119 = vrsqrt.f32 %v81_v10  ;;  %vm88_vm2 = vweird.f32 %v81_v10 }
 0x111   :  { %v120_v11 = vpop.eup %119 }
 0x112   :  { %v83_v12 = vmul.f32 %v120_v11, %v81_v10  ;;  %vm89_vm1 = vweird.f32 %v120_v11 }
 0x113   :  { %vm90_vm3 = vmor %vm88_vm2, %vm89_vm1 }
 0x114   :  { %v84_v13 = vmul.f32 %v120_v11, %v83_v12 }
 0x116   :  { %v85_v14 = vmul.f32 0.5, %v84_v13 }
 0x118   :  { %v86_v15 = vsub.f32 1.5, %v85_v14 }
 0x11a   :  { %v87_v16 = vmul.f32 %v120_v11, %v86_v15 }
 0x11c   :  { %v91_v17 = vsel %vm90_vm3, %v120_v11, %v87_v16 }
 0x11d   :  { %v92_v18 = vmul.f32 %v91_v17, %v76_v7 }
 0x11f   :  { %93 = vst [vmem:[#allocation7] sm:$0xff] %v92_v18 }
 0x120   :  { %104 = dma.vmem_to_hbm [thread:$0]  %s100_s25, 128, %s102_s2, [#allocation4]  }
 0x121   :  { %197 = dma.done.wait [#allocation4], 128  }
 0x122   :  { %198 = vsyncadd [#allocation4], 4294967168 }
 0x123   :  { %109 = vsyncpa [#allocation3], 1 }
 0x124   :  { %110 = vsyncpa [#allocation6], 1 }
 0x125   :  { %111 = vsyncpa [#allocation4], 1 }

</bundles_post_ra>
